<compile_context>
chip_gen: v7x
topology: tpu7x:2x2x1
jax: 0.10.0
libtpu: 0.0.40
codegen_flags: <defaults>
</compile_context>

<pallas_src>
import functools

import jax
import jax.numpy as jnp
from jax.experimental import pallas as pl
from jax.experimental.pallas import tpu as pltpu

P = 4          # rows packed per lane-dense row (4 * 32 features = 128 lanes)
IN_F = 64
OUT_F = 32
EPS = 1e-5
NEG_SLOPE = 0.01


def _stats_kernel(xp_ref, w_ref, part_ref):
    """Accumulate per-lane (sum, sum-of-squares) of y = xp @ w_blk into part_ref.

    Grid is (core, tile); part_ref is this core's resident (2,128) partial.
    """
    k = pl.program_id(1)

    @pl.when(k == 0)
    def _():
        part_ref[...] = jnp.zeros_like(part_ref)

    y = jnp.dot(xp_ref[...], w_ref[...], preferred_element_type=jnp.float32)
    part_ref[...] += jnp.concatenate(
        [jnp.sum(y, axis=0, keepdims=True),
         jnp.sum(y * y, axis=0, keepdims=True)], axis=0)


def _apply_kernel(xp_ref, w_ref, ss_ref, o_ref):
    y = jnp.dot(xp_ref[...], w_ref[...], preferred_element_type=jnp.float32)
    ss = ss_ref[...]
    z = y * ss[0:1, :] + ss[1:2, :]                  # folded BN: single FMA pair
    o_ref[...] = jnp.maximum(z, NEG_SLOPE * z)       # LeakyReLU (slope < 1)


def _round_up(a, m):
    return -(-a // m) * m


@functools.partial(jax.jit, static_argnames=("max_bp",))
def dsfe_forward(x, w, gamma, beta, *, max_bp=2048):
    """x: (N, 64), w: (32, 64), gamma/beta: (32,). Returns (N, 32) float32."""
    n, in_f = x.shape
    out_f = w.shape[0]
    assert in_f == IN_F and out_f == OUT_F

    # --- tiling: even number of tiles >= 2 (megacore), bp multiple of 8, <= max_bp
    np_rows = pl.cdiv(n, P)                                   # packed rows needed
    num_tiles = max(2, 2 * pl.cdiv(np_rows, 2 * max_bp))      # always even
    bp = _round_up(pl.cdiv(np_rows, num_tiles), 8)            # <= max_bp
    np_pad = num_tiles * bp
    n_pad = np_pad * P

    cdt = jnp.bfloat16                                        # HBM storage / MXU input dtype
    xq = x.astype(cdt)
    if n_pad > n:                                             # zero-pad: exactly neutral
        xq = jnp.concatenate([xq, jnp.zeros((n_pad - n, in_f), cdt)], axis=0)
    xp = xq.reshape(np_pad, P * in_f)                         # (np_pad, 256)

    # Block-diagonal weight: 4 copies of W^T -> (256, 128).
    w_blk = jnp.kron(jnp.eye(P, dtype=jnp.float32),
                     w.astype(jnp.float32).T).astype(cdt)

    n_cores = 2
    tiles_per_core = num_tiles // n_cores

    xp_full_spec = pl.BlockSpec((bp, P * in_f), lambda k: (k, 0))
    w_full_spec = pl.BlockSpec((P * in_f, P * out_f), lambda k: (0, 0))

    # ---- Phase 1: per-core partial (sum, sumsq), megacore split on v7x ----
    partials = pl.pallas_call(
        _stats_kernel,
        out_shape=jax.ShapeDtypeStruct((n_cores, 2, P * out_f), jnp.float32),
        grid_spec=pltpu.PrefetchScalarGridSpec(
            num_scalar_prefetch=0,
            grid=(n_cores, tiles_per_core),
            in_specs=[
                pl.BlockSpec((bp, P * in_f),
                             lambda c, k: (c * tiles_per_core + k, 0)),
                pl.BlockSpec((P * in_f, P * out_f), lambda c, k: (0, 0)),
            ],
            out_specs=pl.BlockSpec((None, 2, P * out_f), lambda c, k: (c, 0, 0))),
        compiler_params=pltpu.CompilerParams(
            dimension_semantics=("parallel", "arbitrary"),
            vmem_limit_bytes=32 * 1024 * 1024),
    )(xp, w_blk)

    # ---- Tiny jnp epilogue: combine cores + lane groups, fold BN affine ----
    inv_n = 1.0 / n                                           # TRUE row count
    tot = partials.sum(axis=0).reshape(2, P, out_f).sum(axis=1)   # (2, 32)
    mean = tot[0] * inv_n
    var = jnp.maximum(tot[1] * inv_n - mean * mean, 0.0)      # clamp f32 cancellation
    scale = gamma.astype(jnp.float32) * jax.lax.rsqrt(var + EPS)
    shift = beta.astype(jnp.float32) - mean * scale
    scale_shift = jnp.stack([jnp.tile(scale, P), jnp.tile(shift, P)], axis=0)  # (2,128)

    # ---- Phase 2: recompute y, apply folded BN + LeakyReLU, lane-dense store ----
    out_packed = pl.pallas_call(
        _apply_kernel,
        out_shape=jax.ShapeDtypeStruct((np_pad, P * out_f), jnp.float32),
        grid_spec=pltpu.PrefetchScalarGridSpec(
            num_scalar_prefetch=0,
            grid=(num_tiles,),
            in_specs=[xp_full_spec, w_full_spec,
                      pl.BlockSpec((2, P * out_f), lambda k: (0, 0))],
            out_specs=pl.BlockSpec((bp, P * out_f), lambda k: (k, 0))),
        compiler_params=pltpu.CompilerParams(
            dimension_semantics=("parallel",),                # megacore split on v7x
            vmem_limit_bytes=32 * 1024 * 1024),
    )(xp, w_blk, scale_shift)

    return out_packed.reshape(n_pad, out_f)[:n]


if __name__ == "__main__":
    key = jax.random.PRNGKey(0)
    k_x, k_w, k_b, k_g, k_be = jax.random.split(key, 5)

    batch = 202                                  # NOT a multiple of 4 -> exercises padding
    bound = 1.0 / (IN_F ** 0.5)
    W = jax.random.uniform(k_w, (OUT_F, IN_F), jnp.float32, -bound, bound)
    b = jax.random.uniform(k_b, (1, OUT_F), jnp.float32, -bound, bound)
    gamma = jax.random.uniform(k_g, (OUT_F,), jnp.float32, 0.5, 1.5)
    beta = 0.1 * jax.random.normal(k_be, (OUT_F,), jnp.float32)
    x = jax.random.normal(k_x, (batch, IN_F), jnp.float32)

    out = dsfe_forward(x, W, gamma, beta)
    jax.block_until_ready(out)

    # Pure-JAX reference (bias INCLUDED, to confirm the kernel's bias removal is
    # exactly cancelled by the training-mode batch mean).  Inputs rounded to bf16
    # to match the kernel's HBM storage dtype.
    xq = x.astype(jnp.bfloat16).astype(jnp.float32)
    wq = W.astype(jnp.bfloat16).astype(jnp.float32)
    y = xq @ wq.T + b
    mean = jnp.mean(y, axis=0, keepdims=True)
    var = jnp.mean((y - mean) ** 2, axis=0, keepdims=True)
    z = (y - mean) / jnp.sqrt(var + 1e-5) * gamma + beta
    ref = jnp.where(z >= 0, z, 0.01 * z)

    assert out.shape == (batch, OUT_F), out.shape
    assert jnp.allclose(out, ref, atol=1e-3, rtol=1e-3), float(
        jnp.max(jnp.abs(out - ref)))
    print("KERNEL_OK")
</pallas_src>

<mosaic_0001>
module attributes {stable_mosaic.version = 11 : i64} {
  func.func @_stats_kernel(%arg0: i32, %arg1: i32, %arg2: memref<32x256xbf16, #tpu.memory_space<vmem>>, %arg3: memref<256x128xbf16, #tpu.memory_space<vmem>>, %arg4: memref<1x2x128xf32, #tpu.memory_space<vmem>>) attributes {dimension_semantics = [#tpu.dimension_semantics<parallel>, #tpu.dimension_semantics<arbitrary>], iteration_bounds = array<i64: 2, 1>, scalar_prefetch = 0 : i64, scratch_operands = 0 : i64, tpu.core_type = #tpu.core_type<tc>, window_params = [{transform_indices = @transform_0, window_bounds = array<i64: 32, 256>}, {pipeline_mode = #tpu.pipeline_mode<synchronous>, transform_indices = @transform_1, window_bounds = array<i64: 256, 128>}, {transform_indices = @transform_2, window_bounds = array<i64: 1, 2, 128>}]} {
    %c0_i32 = arith.constant 0 : i32
    %0 = arith.cmpi eq, %arg1, %c0_i32 : i32
    %1 = arith.extui %0 : i1 to i32
    %c0_i32_0 = arith.constant 0 : i32
    %2 = arith.cmpi ne, %1, %c0_i32_0 : i32
    scf.if %2 {
      %cst_12 = arith.constant 0.000000e+00 : f32
      %18 = vector.broadcast %cst_12 : f32 to vector<2x128xf32>
      %c0_13 = arith.constant 0 : index
      %c0_14 = arith.constant 0 : index
      %c0_15 = arith.constant 0 : index
      %19 = vector.load %arg4[%c0_13, %c0_14, %c0_15] : memref<1x2x128xf32, #tpu.memory_space<vmem>>, vector<1x2x128xf32>
      %20 = vector.shape_cast %19 : vector<1x2x128xf32> to vector<2x128xf32>
      %21 = vector.shape_cast %18 : vector<2x128xf32> to vector<1x2x128xf32>
      tpu.vector_store %arg4[%c0_13, %c0_14, %c0_15], %21 {strides = array<i32>} : memref<1x2x128xf32, #tpu.memory_space<vmem>>, vector<1x2x128xf32>,
    } else {
    }
    %c0 = arith.constant 0 : index
    %c0_1 = arith.constant 0 : index
    %3 = vector.load %arg2[%c0, %c0_1] : memref<32x256xbf16, #tpu.memory_space<vmem>>, vector<32x256xbf16>
    %c0_2 = arith.constant 0 : index
    %c0_3 = arith.constant 0 : index
    %4 = vector.load %arg3[%c0_2, %c0_3] : memref<256x128xbf16, #tpu.memory_space<vmem>>, vector<256x128xbf16>
    %cst = arith.constant dense<0.000000e+00> : vector<32x128xf32>
    %5 = tpu.matmul %3, %4, %cst {dimension_numbers = #tpu.dot_dimension_numbers<[1], [0], [0], [1], [0, 0, 1, 1], [], []>} : vector<32x256xbf16>, vector<256x128xbf16>, vector<32x128xf32> -> vector<32x128xf32>
    %c0_4 = arith.constant 0 : index
    %c0_5 = arith.constant 0 : index
    %c0_6 = arith.constant 0 : index
    %6 = vector.load %arg4[%c0_4, %c0_5, %c0_6] : memref<1x2x128xf32, #tpu.memory_space<vmem>>, vector<1x2x128xf32>
    %7 = vector.shape_cast %6 : vector<1x2x128xf32> to vector<2x128xf32>
    %cst_7 = arith.constant dense<0.000000e+00> : vector<128xf32>
    %8 = vector.multi_reduction <add>, %5, %cst_7 [0] : vector<32x128xf32> to vector<128xf32>
    %9 = vector.shape_cast %8 : vector<128xf32> to vector<1x128xf32>
    %10 = arith.mulf %5, %5 : vector<32x128xf32>
    %cst_8 = arith.constant dense<0.000000e+00> : vector<128xf32>
    %11 = vector.multi_reduction <add>, %10, %cst_8 [0] : vector<32x128xf32> to vector<128xf32>
    %12 = vector.shape_cast %11 : vector<128xf32> to vector<1x128xf32>
    %13 = tpu.concatenate %9, %12 in 0 : vector<1x128xf32>, vector<1x128xf32> -> vector<2x128xf32>
    %14 = arith.addf %7, %13 : vector<2x128xf32>
    %c0_9 = arith.constant 0 : index
    %c0_10 = arith.constant 0 : index
    %c0_11 = arith.constant 0 : index
    %15 = vector.load %arg4[%c0_9, %c0_10, %c0_11] : memref<1x2x128xf32, #tpu.memory_space<vmem>>, vector<1x2x128xf32>
    %16 = vector.shape_cast %15 : vector<1x2x128xf32> to vector<2x128xf32>
    %17 = vector.shape_cast %14 : vector<2x128xf32> to vector<1x2x128xf32>
    tpu.vector_store %arg4[%c0_9, %c0_10, %c0_11], %17 {strides = array<i32>} : memref<1x2x128xf32, #tpu.memory_space<vmem>>, vector<1x2x128xf32>,
    return
  }
  func.func @transform_0(%arg0: i32, %arg1: i32) -> (i32, i32) {
    %c1_i32 = arith.constant 1 : i32
    %0 = arith.muli %arg0, %c1_i32 : i32
    %1 = arith.addi %0, %arg1 : i32
    %c0_i32 = arith.constant 0 : i32
    %c0_i32_0 = arith.constant 0 : i32
    return %1, %c0_i32 : i32, i32
  }
  func.func @transform_1(%arg0: i32, %arg1: i32) -> (i32, i32) {
    %c0_i32 = arith.constant 0 : i32
    %c0_i32_0 = arith.constant 0 : i32
    %c0_i32_1 = arith.constant 0 : i32
    return %c0_i32, %c0_i32_0 : i32, i32
  }
  func.func @transform_2(%arg0: i32, %arg1: i32) -> (i32, i32, i32) {
    %c0_i32 = arith.constant 0 : i32
    %c0_i32_0 = arith.constant 0 : i32
    %c0_i32_1 = arith.constant 0 : i32
    return %arg0, %c0_i32, %c0_i32_0 : i32, i32, i32
  }
}

module attributes {stable_mosaic.version = 11 : i64} {
  func.func @_apply_kernel(%arg0: i32, %arg1: memref<32x256xbf16, #tpu.memory_space<vmem>>, %arg2: memref<256x128xbf16, #tpu.memory_space<vmem>>, %arg3: memref<2x128xf32, #tpu.memory_space<vmem>>, %arg4: memref<32x128xf32, #tpu.memory_space<vmem>>) attributes {dimension_semantics = [#tpu.dimension_semantics<parallel>], iteration_bounds = array<i64: 2>, scalar_prefetch = 0 : i64, scratch_operands = 0 : i64, tpu.core_type = #tpu.core_type<tc>, window_params = [{transform_indices = @transform_0, window_bounds = array<i64: 32, 256>}, {pipeline_mode = #tpu.pipeline_mode<synchronous>, transform_indices = @transform_1, window_bounds = array<i64: 256, 128>}, {pipeline_mode = #tpu.pipeline_mode<synchronous>, transform_indices = @transform_2, window_bounds = array<i64: 2, 128>}, {transform_indices = @transform_3, window_bounds = array<i64: 32, 128>}]} {
    %c0 = arith.constant 0 : index
    %c0_0 = arith.constant 0 : index
    %0 = vector.load %arg1[%c0, %c0_0] : memref<32x256xbf16, #tpu.memory_space<vmem>>, vector<32x256xbf16>
    %c0_1 = arith.constant 0 : index
    %c0_2 = arith.constant 0 : index
    %1 = vector.load %arg2[%c0_1, %c0_2] : memref<256x128xbf16, #tpu.memory_space<vmem>>, vector<256x128xbf16>
    %cst = arith.constant dense<0.000000e+00> : vector<32x128xf32>
    %2 = tpu.matmul %0, %1, %cst {dimension_numbers = #tpu.dot_dimension_numbers<[1], [0], [0], [1], [0, 0, 1, 1], [], []>} : vector<32x256xbf16>, vector<256x128xbf16>, vector<32x128xf32> -> vector<32x128xf32>
    %c0_3 = arith.constant 0 : index
    %c0_4 = arith.constant 0 : index
    %3 = vector.load %arg3[%c0_3, %c0_4] : memref<2x128xf32, #tpu.memory_space<vmem>>, vector<2x128xf32>
    %4 = vector.extract_strided_slice %3 {offsets = [0, 0], sizes = [1, 128], strides = [1, 1]} : vector<2x128xf32> to vector<1x128xf32>
    %5 = vector.broadcast %4 : vector<1x128xf32> to vector<32x128xf32>
    %6 = arith.mulf %2, %5 : vector<32x128xf32>
    %7 = vector.extract_strided_slice %3 {offsets = [1, 0], sizes = [1, 128], strides = [1, 1]} : vector<2x128xf32> to vector<1x128xf32>
    %8 = vector.broadcast %7 : vector<1x128xf32> to vector<32x128xf32>
    %9 = arith.addf %6, %8 : vector<32x128xf32>
    %cst_5 = arith.constant 0.00999999977 : f32
    %10 = vector.broadcast %cst_5 : f32 to vector<32x128xf32>
    %11 = arith.mulf %10, %9 : vector<32x128xf32>
    %12 = arith.maximumf %9, %11 : vector<32x128xf32>
    %c0_6 = arith.constant 0 : index
    %c0_7 = arith.constant 0 : index
    %13 = vector.load %arg4[%c0_6, %c0_7] : memref<32x128xf32, #tpu.memory_space<vmem>>, vector<32x128xf32>
    tpu.vector_store %arg4[%c0_6, %c0_7], %12 {strides = array<i32>} : memref<32x128xf32, #tpu.memory_space<vmem>>, vector<32x128xf32>,
    return
  }
  func.func @transform_0(%arg0: i32) -> (i32, i32) {
    %c0_i32 = arith.constant 0 : i32
    %c0_i32_0 = arith.constant 0 : i32
    return %arg0, %c0_i32 : i32, i32
  }
  func.func @transform_1(%arg0: i32) -> (i32, i32) {
    %c0_i32 = arith.constant 0 : i32
    %c0_i32_0 = arith.constant 0 : i32
    %c0_i32_1 = arith.constant 0 : i32
    return %c0_i32, %c0_i32_0 : i32, i32
  }
  func.func @transform_2(%arg0: i32) -> (i32, i32) {
    %c0_i32 = arith.constant 0 : i32
    %c0_i32_0 = arith.constant 0 : i32
    %c0_i32_1 = arith.constant 0 : i32
    return %c0_i32, %c0_i32_0 : i32, i32
  }
  func.func @transform_3(%arg0: i32) -> (i32, i32) {
    %c0_i32 = arith.constant 0 : i32
    %c0_i32_0 = arith.constant 0 : i32
    return %arg0, %c0_i32 : i32, i32
  }
}

</mosaic_0001>

<bundles_post_ra>
// kernel: tile.17
= control target key start
LH: loop header
LB: loop body
LE: loop exit
PB: predicated region body
PF: predicated region fallthrough
CT: control target
= control target key end

     0   :  { %s22_s0 = inlined_call_operand.vmem [shape: f32[32], index: 0, kind: input, shape index: {}]   ;;  %s23_s1 = inlined_call_operand.vmem [shape: f32[4,32], index: 1, kind: output, shape index: {}]  }
   0x1   :  { %v4_v0 = vld [vmem:[%s22_s0] ss:$0 sm:$0xff] }
   0x2   :  { %5 = vst [vmem:[%s23_s1] sm:$0xf] %v4_v0 }

// kernel: tile.19
= control target key start
LH: loop header
LB: loop body
LE: loop exit
PB: predicated region body
PF: predicated region fallthrough
CT: control target
= control target key end

     0   :  { %vm7_vm0 = vcmask 261120   ;;  %s37_s8 = smov 32   ;;  %s38_s9 = smov 64   ;;  %vm13_vm1 = vcmask 1048320   ;;  %vm19_vm2 = vcmask 785920   ;;  %vm25_vm3 = vcmask 523520   ;;  %s55_s0 = inlined_call_operand.vmem [shape: f32[4,32], index: 0, kind: input, shape index: {}]   ;;  %s56_s1 = inlined_call_operand.vmem [shape: f32[1,128], index: 1, kind: output, shape index: {}]  }
   0x1   :  { %v4_v0 = vld [vmem:[%s55_s0] sm:$0xf]  ;;  %s36_s0 = smov 96  }
   0x2   :  { %5 = vst [vmem:[#allocation1] sm:$0xf] %v4_v0 }
   0x9   :  { %v10_v1 = vld [vmem:[#allocation1 + $0x3] sm:$0x1]   ;;  %v22_v2 = vld [vmem:[#allocation1 + $0x1] sm:$0x1]   ;;  %v6_v3 = vld [vmem:[#allocation1] sm:$0x1]  }
   0xa   :  { %11 = vrot.lane.b32.xlu0 %v10_v1, %s36_s0  ;;  %23 = vrot.lane.b32.xlu1 %v22_v2, %s37_s8  ;;  %v16_v4 = vld [vmem:[#allocation1 + $0x2] sm:$0x1]   ;;  %8 = vst.msk [vmem:[#allocation0] sm:$0x1] %vm7_vm0, %v6_v3  }
   0xe   :  { %17 = vrot.lane.b32.xlu0 %v16_v4, %s38_s9 }
  0x7c   :  { %v12_v5 = vpop.permute.xlu0 %11   ;;  %v24_v6 = vpop.permute.xlu1 %23  }
  0x7d   :  { %14 = vst.msk [vmem:[#allocation0] sm:$0x1] %vm13_vm1, %v12_v5  }
  0x80   :  { %v18_v7 = vpop.permute.xlu0 %17  }
  0x81   :  { %20 = vst.msk [vmem:[#allocation0] sm:$0x1] %vm19_vm2, %v18_v7  }
  0x82   :  { %26 = vst.msk [vmem:[#allocation0] sm:$0x1] %vm25_vm3, %v24_v6  }
  0x89   :  { %v30_v8 = vld [vmem:[#allocation0] sm:$0x1] }
  0x8a   :  { %32 = vst [vmem:[%s56_s1] sm:$0x1] %v30_v8 }

// kernel: dsfe_forward.2
= control target key start
LH: loop header
LB: loop body
LE: loop exit
PB: predicated region body
PF: predicated region fallthrough
CT: control target
= control target key end

     0   :  { %s624_s9 = smov 0   ;;  %s626_s10 = smov 0   ;;  %s715_s0 = inlined_call_operand.vmem [shape: bf16[64,256], index: 0, kind: input, shape index: {}]   ;;  %s716_s1 = inlined_call_operand.vmem [shape: bf16[256,128], index: 1, kind: input, shape index: {}]   ;;  %s717_s2 = inlined_call_operand.vmem [shape: f32[2,2,128], index: 2, kind: output, shape index: {}]  }
   0x1   :  { %s628_s11 = smov 0  }
   0x2 LB: > { %s24_s12 = sadd.s32 1, %s602_s10  ;;  %p465_p0 = scmp.ge.s32.totalorder %s606_s11, 1  ;;  %s606_s11 = sphi %s628_s11, %s12_s11   ;;  %s602_s10 = sphi %s626_s10, %s719_s10   ;;  %s598_s9 = sphi %s624_s9, %s718_s9  }
   0x3   : > { %p26_p1 = scmp.ge.s32.totalorder %s24_s12, 2  ;;  %p130_p2 = scmp.lt.s32.totalorder %s606_s11, 3 }
   0x5   : > { %s721_s12 = smov (%p26_p1, %s24_s12), 0  ;;  %p131_p3 = pnand %p465_p0, %p130_p2 }
   0x6   : > { %v562_v0 = vld [vmem:[%s716_s1 + $0x40] sm:$0xff] (!%p131_p3)   ;;  %s466_s15 = sshll.u32 (!%p131_p3), %s598_s9, 2  ;;  %v564_v2 = vld [vmem:[%s716_s1 + $0x48] sm:$0xff] (!%p131_p3)   ;;  %v566_v4 = vld [vmem:[%s716_s1 + $0x50] sm:$0xff] (!%p131_p3)   ;;  %p162_p5 = scmp.lt.s32.totalorder (!%p131_p3), %s598_s9, 1  ;;  %v608_v20 = vmov (!%p131_p3), 0.0  }
   0x7   : > { %134 = sbr.rel (%p131_p3) target bundleno = 280 (0x118), region = 28  ;;  %v563_v1 = vld [vmem:[%s716_s1] sm:$0xff] (!%p131_p3)   ;;  %493 = vmatprep.subr.bf16.mxu0 (!%p131_p3), %v562_v0  ;;  %521 = vmatprep.subr.bf16.mxu1 (!%p131_p3), %v562_v0  ;;  %v565_v3 = vld [vmem:[%s716_s1 + $0x8] sm:$0xff] (!%p131_p3)   ;;  %p155_p4 = scmp.lt.s32.totalorder (!%p131_p3), %s466_s15, 7  ;;  %v567_v5 = vld [vmem:[%s716_s1 + $0x10] sm:$0xff] (!%p131_p3)   ;;  %vm396_vm0 = vcmask (!%p131_p3), 1040384  }
   0x8   : > { %494 = vmatpush3.bf16.msra.mxu0 (!%p131_p3), %v563_v1  ;;  %529 = vmatpush3.bf16.msra.mxu1 (!%p131_p3), %v563_v1  ;;  %v568_v6 = vld [vmem:[%s716_s1 + $0x58] sm:$0xff] (!%p131_p3)   ;;  %v570_v8 = vld [vmem:[%s716_s1 + $0x60] sm:$0xff] (!%p131_p3)   ;;  %v572_v10 = vld [vmem:[%s716_s1 + $0x68] sm:$0xff] (!%p131_p3)  }
   0x9   : > { %495 = vmatprep.subr.bf16.mxu0 (!%p131_p3), %v564_v2  ;;  %522 = vmatprep.subr.bf16.mxu1 (!%p131_p3), %v564_v2  ;;  %v569_v7 = vld [vmem:[%s716_s1 + $0x18] sm:$0xff] (!%p131_p3)   ;;  %v571_v9 = vld [vmem:[%s716_s1 + $0x20] sm:$0xff] (!%p131_p3)   ;;  %v573_v13 = vld [vmem:[%s716_s1 + $0x28] sm:$0xff] (!%p131_p3)  }
   0xa   : > { %v574_v14 = vld [vmem:[%s716_s1 + $0x70] sm:$0xff] (!%p131_p3)   ;;  %v576_v16 = vld [vmem:[%s716_s1 + $0x78] sm:$0xff] (!%p131_p3)  }
   0xb   : > { %v575_v15 = vld [vmem:[%s716_s1 + $0x30] sm:$0xff] (!%p131_p3)   ;;  %v577_v17 = vld [vmem:[%s716_s1 + $0x38] sm:$0xff] (!%p131_p3)  }
   0xc   : > { %496 = vmatpush3.bf16.msra.mxu0 (!%p131_p3), %v565_v3  ;;  %530 = vmatpush3.bf16.msra.mxu1 (!%p131_p3), %v565_v3 }
   0xd   : > { %497 = vmatprep.subr.bf16.mxu0 (!%p131_p3), %v566_v4  ;;  %523 = vmatprep.subr.bf16.mxu1 (!%p131_p3), %v566_v4 }
   0xe   : > { %s723_s15 = smov (!%p155_p4, %s466_s15), 7  ;;  %s725_s9 = smov (!%p162_p5, %s598_s9), 1 }
   0xf   : > { %s492_s30 = sshll.u32 %s723_s15, 3  ;;  %s469_s26 = sshll.u32 %s725_s9, 1 }
  0x10   : > { %498 = vmatpush3.bf16.msra.mxu0 %v567_v5  ;;  %531 = vmatpush3.bf16.msra.mxu1 %v567_v5  ;;  %s159_s7 = scalar_lea.vmem %s715_s0, %s492_s30  ;;  %s701_s29 = scalar_lea.vmem %s717_s2, %s469_s26 }
  0x11   : > { %499 = vmatprep.subr.bf16.mxu0 %v568_v6  ;;  %524 = vmatprep.subr.bf16.mxu1 %v568_v6  ;;  %v580_v11 = vld [vmem:[%s159_s7 + $0x4] ss:$8 sps:$4 sm:$0xff]   ;;  %v583_v12 = vld [vmem:[%s159_s7 + $0x14] ss:$8 sps:$4 sm:$0xff]   ;;  %v578_v18 = vld [vmem:[%s159_s7] ss:$8 sps:$4 sm:$0xff]  }
  0x12   : > { %356 = vmatprep.mubr.bf16.mxu0 %v580_v11  ;;  %364 = vmatprep.mubr.bf16.mxu1 %v583_v12  ;;  %v581_v19 = vld [vmem:[%s159_s7 + $0x10] ss:$8 sps:$4 sm:$0xff]   ;;  %171 = vst [vmem:[%s701_s29] sm:$0x3] %v608_v20 }
  0x14   : > { %500 = vmatpush3.bf16.msra.mxu0 %v569_v7  ;;  %532 = vmatpush3.bf16.msra.mxu1 %v569_v7 }
  0x15   : > { %501 = vmatprep.subr.bf16.mxu0 %v570_v8  ;;  %525 = vmatprep.subr.bf16.mxu1 %v570_v8 }
  0x18   : > { %502 = vmatpush3.bf16.msra.mxu0 %v571_v9  ;;  %533 = vmatpush3.bf16.msra.mxu1 %v571_v9 }
  0x19   : > { %503 = vmatprep.subr.bf16.mxu0 %v572_v10  ;;  %526 = vmatprep.subr.bf16.mxu1 %v572_v10  ;;  %v373_v53 = vld [vmem:[%s701_s29] sm:$0x3] }
  0x1c   : > { %504 = vmatpush3.bf16.msra.mxu0 %v573_v13  ;;  %534 = vmatpush3.bf16.msra.mxu1 %v573_v13 }
  0x1d   : > { %505 = vmatprep.subr.bf16.mxu0 %v574_v14  ;;  %527 = vmatprep.subr.bf16.mxu1 %v574_v14 }
  0x20   : > { %506 = vmatpush3.bf16.msra.mxu0 %v575_v15  ;;  %535 = vmatpush3.bf16.msra.mxu1 %v575_v15 }
  0x21   : > { %507 = vmatprep.subr.bf16.mxu0 %v576_v16  ;;  %528 = vmatprep.subr.bf16.mxu1 %v576_v16 }
  0x24   : > { %508 = vmatpush3.bf16.msra.mxu0 %v577_v17  ;;  %536 = vmatpush3.bf16.msra.mxu1 %v577_v17 }
  0x27   : > { %357 = vmatmul.mubr.bf16.vlgmr.msra.gmra.mrb[0].mxu0 %v578_v18  ;;  %365 = vmatmul.mubr.bf16.vlgmr.msra.gmra.mrb[0].mxu1 %v581_v19 }
  0xfa   : > { %v509_v21 = vpop.f32.mrb[0].mxu0  ;;  %v515_v22 = vpop.f32.mrb[0].mxu1 }
  0xfb   : > { %v510_v23 = vpop.f32.mrb[1].mxu0  ;;  %v516_v24 = vpop.f32.mrb[1].mxu1 }
  0xfc   : > { %v511_v25 = vadd.f32 %v510_v23, %v509_v21  ;;  %v512_v26 = vpop.f32.mrb[2].mxu0  ;;  %v517_v27 = vadd.f32 %v516_v24, %v515_v22  ;;  %v518_v28 = vpop.f32.mrb[2].mxu1 }
  0xfd   : > { %v513_v29 = vpop.f32.mrb[3].mxu0  ;;  %v519_v30 = vpop.f32.mrb[3].mxu1 }
  0xfe   : > { %v514_v31 = vadd.f32 %v513_v29, %v512_v26  ;;  %v520_v32 = vadd.f32 %v519_v30, %v518_v28  ;;  %v383_v33 = vmul.f32 %v511_v25, %v511_v25  ;;  %v385_v34 = vmul.f32 %v517_v27, %v517_v27 }
 0x100   : > { %v374_v35 = vadd.f32 %v514_v31, %v511_v25  ;;  %v384_v36 = vmul.f32 %v514_v31, %v514_v31  ;;  %v386_v40 = vmul.f32 %v520_v32, %v520_v32 }
 0x102   : > { %v387_v37 = vadd.f32 %v384_v36, %v383_v33  ;;  %v375_v38 = vadd.f32 %v517_v27, %v374_v35 }
 0x104   : > { %v376_v39 = vadd.f32 %v520_v32, %v375_v38  ;;  %v388_v41 = vadd.f32 %v387_v37, %v385_v34 }
 0x106   : > { %v377_v42 = vrot.slane %v376_v39, 4  ;;  %v389_v43 = vadd.f32 %v388_v41, %v386_v40 }
 0x108   : > { %v378_v44 = vadd.f32 %v377_v42, %v376_v39  ;;  %v390_v45 = vrot.slane %v389_v43, 4 }
 0x10a   : > { %v379_v46 = vrot.slane %v378_v44, 2  ;;  %v391_v47 = vadd.f32 %v390_v45, %v389_v43 }
 0x10c   : > { %v380_v48 = vadd.f32 %v379_v46, %v378_v44  ;;  %v392_v49 = vrot.slane %v391_v47, 2 }
 0x10e   : > { %v381_v50 = vrot.slane %v380_v48, 1  ;;  %v393_v51 = vadd.f32 %v392_v49, %v391_v47 }
 0x110   : > { %v394_v52 = vrot.slane %v393_v51, 1  ;;  %v382_v54 = vadd.f32 %v381_v50, %v380_v48 }
 0x112   : > { %v395_v55 = vadd.f32 %v394_v52, %v393_v51 }
 0x114   : > { %v397_v56 = vsel %vm396_vm0, %v382_v54, %v395_v55 }
 0x115   : > { %v398_v57 = vadd.f32 %v397_v56, %v373_v53 }
 0x117   : > { %399 = vst [vmem:[%s701_s29] sm:$0x3] %v398_v57 }
 0x118 PF: > { %s12_s11 = sadd.s32 1, %s606_s11   ;;  %s718_s9 = smov %s602_s10 }
 0x119   : > { %p9_p6 = scmp.ge.s32.totalorder %s12_s11, 4   ;;  %s719_s10 = smov %s721_s12 }
 0x11b   :  { %11 = sbr.rel (!%p9_p6) target bundleno = 2 (0x2), region = 62 }

// kernel: dsfe_forward.3
= control target key start
LH: loop header
LB: loop body
LE: loop exit
PB: predicated region body
PF: predicated region fallthrough
CT: control target
= control target key end

     0   :  { %s599_s12 = smov 0   ;;  %s674_s0 = inlined_call_operand.vmem [shape: bf16[64,256], index: 0, kind: input, shape index: {}]   ;;  %s675_s1 = inlined_call_operand.vmem [shape: bf16[256,128], index: 1, kind: input, shape index: {}]   ;;  %s676_s2 = inlined_call_operand.vmem [shape: f32[2,128], index: 2, kind: input, shape index: {}]   ;;  %s677_s3 = inlined_call_operand.vmem [shape: f32[64,128], index: 3, kind: output, shape index: {}]  }
   0x1 LB: > { %s464_s13 = sadd.s32 4294967295, %s577_s12   ;;  %p468_p0 = scmp.ge.s32.totalorder %s577_s12, 1  ;;  %s577_s12 = sphi %s599_s12, %s13_s12  }
   0x2   : > { %p139_p1 = scmp.lt.s32.totalorder %s577_s12, 3 }
   0x4   : > { %p140_p2 = pnand %p468_p0, %p139_p1 }
   0x5   : > { %v549_v0 = vld [vmem:[%s675_s1 + $0x40] sm:$0xff] (!%p140_p2)   ;;  %s469_s16 = sshll.u32 (!%p140_p2), %s464_s13, 2  ;;  %v551_v2 = vld [vmem:[%s675_s1 + $0x48] sm:$0xff] (!%p140_p2)   ;;  %v553_v4 = vld [vmem:[%s675_s1 + $0x50] sm:$0xff] (!%p140_p2)   ;;  %v380_v20 = vlaneseq (!%p140_p2) }
   0x6   : > { %143 = sbr.rel (%p140_p2) target bundleno = 264 (0x108), region = 32  ;;  %v550_v1 = vld [vmem:[%s675_s1] sm:$0xff] (!%p140_p2)   ;;  %497 = vmatprep.subr.bf16.mxu0 (!%p140_p2), %v549_v0  ;;  %525 = vmatprep.subr.bf16.mxu1 (!%p140_p2), %v549_v0  ;;  %v552_v3 = vld [vmem:[%s675_s1 + $0x8] sm:$0xff] (!%p140_p2)   ;;  %p165_p3 = scmp.lt.s32.totalorder (!%p140_p2), %s469_s16, 7  ;;  %v554_v5 = vld [vmem:[%s675_s1 + $0x10] sm:$0xff] (!%p140_p2)  }
   0x7   : > { %498 = vmatpush3.bf16.msra.mxu0 (!%p140_p2), %v550_v1  ;;  %533 = vmatpush3.bf16.msra.mxu1 (!%p140_p2), %v550_v1  ;;  %v555_v6 = vld [vmem:[%s675_s1 + $0x58] sm:$0xff] (!%p140_p2)   ;;  %v557_v8 = vld [vmem:[%s675_s1 + $0x60] sm:$0xff] (!%p140_p2)   ;;  %v559_v10 = vld [vmem:[%s675_s1 + $0x68] sm:$0xff] (!%p140_p2)   ;;  %v381_v21 = vshrl.u32 (!%p140_p2), %v380_v20, 7 }
   0x8   : > { %499 = vmatprep.subr.bf16.mxu0 (!%p140_p2), %v551_v2  ;;  %526 = vmatprep.subr.bf16.mxu1 (!%p140_p2), %v551_v2  ;;  %v556_v7 = vld [vmem:[%s675_s1 + $0x18] sm:$0xff] (!%p140_p2)   ;;  %v558_v9 = vld [vmem:[%s675_s1 + $0x20] sm:$0xff] (!%p140_p2)   ;;  %v560_v13 = vld [vmem:[%s675_s1 + $0x28] sm:$0xff] (!%p140_p2)  }
   0x9   : > { %v561_v14 = vld [vmem:[%s675_s1 + $0x70] sm:$0xff] (!%p140_p2)   ;;  %v563_v16 = vld [vmem:[%s675_s1 + $0x78] sm:$0xff] (!%p140_p2)   ;;  %v382_v22 = vsub.s32 (!%p140_p2), 0, %v381_v21  ;;  %v379_v23 = vld [vmem:[%s676_s2] sm:$0x3] (!%p140_p2)  ;;  %v390_v24 = vsub.s32 (!%p140_p2), 1, %v381_v21 }
   0xa   : > { %v562_v15 = vld [vmem:[%s675_s1 + $0x30] sm:$0xff] (!%p140_p2)   ;;  %v564_v17 = vld [vmem:[%s675_s1 + $0x38] sm:$0xff] (!%p140_p2)  }
   0xb   : > { %500 = vmatpush3.bf16.msra.mxu0 (!%p140_p2), %v552_v3  ;;  %534 = vmatpush3.bf16.msra.mxu1 (!%p140_p2), %v552_v3  ;;  %v383_v27 = vrot.slane (!%p140_p2), %v379_v23, %v382_v22  ;;  %v391_v31 = vrot.slane (!%p140_p2), %v379_v23, %v390_v24 }
   0xc   : > { %501 = vmatprep.subr.bf16.mxu0 (!%p140_p2), %v553_v4  ;;  %527 = vmatprep.subr.bf16.mxu1 (!%p140_p2), %v553_v4 }
   0xd   : > { %s679_s16 = smov (!%p165_p3, %s469_s16), 7 }
   0xe   : > { %s496_s4 = sshll.u32 %s679_s16, 3 }
   0xf   : > { %502 = vmatpush3.bf16.msra.mxu0 %v554_v5  ;;  %535 = vmatpush3.bf16.msra.mxu1 %v554_v5  ;;  %s169_s9 = scalar_lea.vmem %s674_s0, %s496_s4  ;;  %s175_s30 = scalar_lea.vmem %s677_s3, %s496_s4 }
  0x10   : > { %503 = vmatprep.subr.bf16.mxu0 %v555_v6  ;;  %528 = vmatprep.subr.bf16.mxu1 %v555_v6  ;;  %v567_v11 = vld [vmem:[%s169_s9 + $0x4] ss:$8 sps:$4 sm:$0xff]   ;;  %v570_v12 = vld [vmem:[%s169_s9 + $0x14] ss:$8 sps:$4 sm:$0xff]   ;;  %v565_v18 = vld [vmem:[%s169_s9] ss:$8 sps:$4 sm:$0xff]  }
  0x11   : > { %362 = vmatprep.mubr.bf16.mxu0 %v567_v11  ;;  %370 = vmatprep.mubr.bf16.mxu1 %v570_v12  ;;  %v568_v19 = vld [vmem:[%s169_s9 + $0x10] ss:$8 sps:$4 sm:$0xff]  }
  0x13   : > { %504 = vmatpush3.bf16.msra.mxu0 %v556_v7  ;;  %536 = vmatpush3.bf16.msra.mxu1 %v556_v7 }
  0x14   : > { %505 = vmatprep.subr.bf16.mxu0 %v557_v8  ;;  %529 = vmatprep.subr.bf16.mxu1 %v557_v8 }
  0x17   : > { %506 = vmatpush3.bf16.msra.mxu0 %v558_v9  ;;  %537 = vmatpush3.bf16.msra.mxu1 %v558_v9 }
  0x18   : > { %507 = vmatprep.subr.bf16.mxu0 %v559_v10  ;;  %530 = vmatprep.subr.bf16.mxu1 %v559_v10 }
  0x1b   : > { %508 = vmatpush3.bf16.msra.mxu0 %v560_v13  ;;  %538 = vmatpush3.bf16.msra.mxu1 %v560_v13 }
  0x1c   : > { %509 = vmatprep.subr.bf16.mxu0 %v561_v14  ;;  %531 = vmatprep.subr.bf16.mxu1 %v561_v14 }
  0x1f   : > { %510 = vmatpush3.bf16.msra.mxu0 %v562_v15  ;;  %539 = vmatpush3.bf16.msra.mxu1 %v562_v15 }
  0x20   : > { %511 = vmatprep.subr.bf16.mxu0 %v563_v16  ;;  %532 = vmatprep.subr.bf16.mxu1 %v563_v16 }
  0x23   : > { %512 = vmatpush3.bf16.msra.mxu0 %v564_v17  ;;  %540 = vmatpush3.bf16.msra.mxu1 %v564_v17 }
  0x26   : > { %363 = vmatmul.mubr.bf16.vlgmr.msra.gmra.mrb[0].mxu0 %v565_v18  ;;  %371 = vmatmul.mubr.bf16.vlgmr.msra.gmra.mrb[0].mxu1 %v568_v19 }
  0xf9   : > { %v513_v25 = vpop.f32.mrb[0].mxu0  ;;  %v519_v26 = vpop.f32.mrb[0].mxu1 }
  0xfa   : > { %v514_v28 = vpop.f32.mrb[1].mxu0  ;;  %v520_v29 = vpop.f32.mrb[1].mxu1 }
  0xfb   : > { %v515_v30 = vadd.f32 %v514_v28, %v513_v25  ;;  %v521_v32 = vadd.f32 %v520_v29, %v519_v26  ;;  %v516_v33 = vpop.f32.mrb[2].mxu0  ;;  %v522_v34 = vpop.f32.mrb[2].mxu1 }
  0xfc   : > { %v517_v35 = vpop.f32.mrb[3].mxu0  ;;  %v523_v36 = vpop.f32.mrb[3].mxu1 }
  0xfd   : > { %v384_v37 = vmul.f32 %v515_v30, %v383_v27  ;;  %v386_v38 = vmul.f32 %v521_v32, %v383_v27  ;;  %v518_v39 = vadd.f32 %v517_v35, %v516_v33  ;;  %v524_v40 = vadd.f32 %v523_v36, %v522_v34 }
  0xff   : > { %v392_v41 = vadd.f32 %v391_v31, %v384_v37  ;;  %v394_v42 = vadd.f32 %v391_v31, %v386_v38  ;;  %v385_v43 = vmul.f32 %v518_v39, %v383_v27  ;;  %v387_v44 = vmul.f32 %v524_v40, %v383_v27 }
 0x101   : > { %v396_v45 = vmul.f32 0.01, %v392_v41  ;;  %v393_v46 = vadd.f32 %v391_v31, %v385_v43  ;;  %v395_v47 = vadd.f32 %v391_v31, %v387_v44  ;;  %v398_v48 = vmul.f32 0.01, %v394_v42 }
 0x103   : > { %v400_v49 = vmax.f32 %v392_v41, %v396_v45  ;;  %v397_v50 = vmul.f32 0.01, %v393_v46  ;;  %v399_v51 = vmul.f32 0.01, %v395_v47  ;;  %v402_v53 = vmax.f32 %v394_v42, %v398_v48 }
 0x105   : > { %404 = vst [vmem:[%s175_s30] sm:$0xff] %v400_v49  ;;  %v401_v52 = vmax.f32 %v393_v46, %v397_v50  ;;  %v403_v54 = vmax.f32 %v395_v47, %v399_v51  ;;  %406 = vst [vmem:[%s175_s30 + $0x10] sm:$0xff] %v402_v53 }
 0x107   : > { %405 = vst [vmem:[%s175_s30 + $0x8] sm:$0xff] %v401_v52  ;;  %407 = vst [vmem:[%s175_s30 + $0x18] sm:$0xff] %v403_v54 }
 0x108 PF: > { %s13_s12 = sadd.s32 1, %s577_s12  }
 0x109   : > { %p10_p4 = scmp.ge.s32.totalorder %s13_s12, 4  }
 0x10b   :  { %12 = sbr.rel (!%p10_p4) target bundleno = 1 (0x1), region = 62 }

</bundles_post_ra>
